<compile_context>
chip_gen: v6e
topology: v6e:2x2x1
jax: 0.10.0
libtpu: 0.0.40
codegen_flags: <defaults>
</compile_context>

<pallas_src>
import functools

import jax
import jax.numpy as jnp
from jax import lax
from jax.experimental import pallas as pl
from jax.experimental.pallas import tpu as pltpu

_SUBLANE = 8
_LANE = 128
_VMEM_LIMIT = 32 * 1024 * 1024          # explicit scoped-VMEM limit (safe on v5e..v7x)
_PER_BUF_BUDGET = 3 * 1024 * 1024       # target bytes per output buffer per grid step
_MIN_STEP_BYTES = 1 * 1024 * 1024       # keep per-step buffer writes >= this when splitting
_MAX_TILE_ROWS = 4096


def _pick_tile_rows(n_rows: int, row_bytes: int, sublane_mult: int) -> int:
    """Rows of the output table per grid step.

    Large enough to amortize the ~0.35 us per-step pipeline overhead, small
    enough that 2 outputs x 2 pipeline buffers stay well inside the scoped-VMEM
    limit on every generation, and (when there is enough work) split into >= 8
    steps so v7x's two TensorCores each get several double-buffered steps.
    """
    if n_rows <= sublane_mult:
        return max(n_rows, 1)                      # single full block (exact array dim)
    tile = min(_MAX_TILE_ROWS, max(sublane_mult, _PER_BUF_BUDGET // row_bytes))
    min_bw_rows = max(sublane_mult, _MIN_STEP_BYTES // row_bytes)
    for steps in (8, 4, 2):                        # prefer >=8 steps, else >=4, else >=2
        if n_rows // steps >= min_bw_rows:
            tile = min(tile, n_rows // steps)
            break
    tile = min(tile, n_rows)
    tile = max(sublane_mult, (tile // sublane_mult) * sublane_mult)
    return tile


def _rope_flat_kernel(inv_freq_ref, pos_off_ref, cos_ref, sin_ref, *, pos_per_row):
    # Lane-dense path for small power-of-two dim (dim divides 128).  Each block
    # is (TR, 128) rows of the row-major flattened [seq, dim] table.  Because
    # dim | 128, the frequency index and the within-row position offset depend
    # only on the lane, so both arrive as resident (1, 128) inputs; only the row
    # base position varies per sublane.
    tr, lanes = cos_ref.shape
    row0 = pl.program_id(0) * tr
    row = (lax.broadcasted_iota(jnp.int32, (tr, lanes), 0) + row0).astype(jnp.float32)
    pos = row * jnp.float32(pos_per_row) + pos_off_ref[...]
    angle = pos * inv_freq_ref[...]
    cos_ref[...] = jnp.cos(angle).astype(cos_ref.dtype)
    sin_ref[...] = jnp.sin(angle).astype(sin_ref.dtype)


def _rope_full_kernel(inv_freq_ref, cos_ref, sin_ref):
    # dim < 256: full-width duplicated inv_freq (1, dim); cos/sin directly on
    # (TS, dim).  No concat, fully lane-dense stores.
    ts, dim = cos_ref.shape
    seq0 = (pl.program_id(0) * ts).astype(jnp.float32)
    t = lax.broadcasted_iota(jnp.int32, (ts, dim), 0).astype(jnp.float32) + seq0
    angle = t * inv_freq_ref[...]
    cos_ref[...] = jnp.cos(angle).astype(cos_ref.dtype)
    sin_ref[...] = jnp.sin(angle).astype(sin_ref.dtype)


def _rope_split_kernel(inv_freq_ref, cos_ref, sin_ref):
    # dim >= 256 (half >= 128): transcendentals on the half-width freqs only,
    # duplicated via two 128-lane-aligned slice stores (no full-width temps).
    ts, dim = cos_ref.shape
    half = dim // 2
    seq0 = (pl.program_id(0) * ts).astype(jnp.float32)
    t = lax.broadcasted_iota(jnp.int32, (ts, half), 0).astype(jnp.float32) + seq0
    angle = t * inv_freq_ref[...]                                        # (TS, half)
    c = jnp.cos(angle).astype(cos_ref.dtype)
    s = jnp.sin(angle).astype(sin_ref.dtype)
    cos_ref[:, :half] = c
    cos_ref[:, half:] = c
    sin_ref[:, :half] = s
    sin_ref[:, half:] = s


def rotary_tables(dim, seq_len, base=10000, out_dtype=jnp.float32, seq_tile=None):
    """Returns (cos, sin), each of shape [1, 1, seq_len, dim] in `out_dtype`."""
    assert dim % 2 == 0 and dim >= 2
    half = dim // 2
    itemsize = jnp.dtype(out_dtype).itemsize
    sublane_mult = _SUBLANE * max(1, 4 // itemsize)   # 8 f32 / 16 bf16 / 32 int8|fp8
    cparams = pltpu.CompilerParams(
        dimension_semantics=("parallel",), vmem_limit_bytes=_VMEM_LIMIT)

    lane_dense = (dim < _LANE and (dim & (dim - 1)) == 0
                  and (seq_len * dim) % _LANE == 0)

    if lane_dense:
        # Flattened lane-dense layout: unmasked 128-lane stores even for dim < 128.
        n_elems = seq_len * dim
        n_rows = n_elems // _LANE
        tile = seq_tile if seq_tile is not None else _pick_tile_rows(
            n_rows, _LANE * itemsize, sublane_mult)
        grid = (pl.cdiv(n_rows, tile),)

        lane = jnp.arange(_LANE, dtype=jnp.int32)
        j = (lane % dim) % half
        inv_freq_lane = (1.0 / (base ** (2.0 * j.astype(jnp.float32) / dim))
                         ).reshape(1, _LANE)
        pos_off = (lane // dim).astype(jnp.float32).reshape(1, _LANE)

        kernel = functools.partial(_rope_flat_kernel, pos_per_row=_LANE // dim)
        cost = pl.CostEstimate(
            flops=3 * n_elems,
            transcendentals=2 * n_elems,
            bytes_accessed=2 * n_elems * itemsize + 2 * _LANE * 4,
        )
        cos, sin = pl.pallas_call(
            kernel,
            out_shape=(
                jax.ShapeDtypeStruct((n_rows, _LANE), out_dtype),
                jax.ShapeDtypeStruct((n_rows, _LANE), out_dtype),
            ),
            grid_spec=pltpu.PrefetchScalarGridSpec(
                num_scalar_prefetch=0,
                grid=grid,
                in_specs=[
                    pl.BlockSpec((1, _LANE), lambda i: (0, 0)),
                    pl.BlockSpec((1, _LANE), lambda i: (0, 0)),
                ],
                out_specs=[
                    pl.BlockSpec((tile, _LANE), lambda i: (i, 0)),
                    pl.BlockSpec((tile, _LANE), lambda i: (i, 0)),
                ],
            ),
            compiler_params=cparams,
            cost_estimate=cost,
        )(inv_freq_lane, pos_off)
        # Contiguous row-major reshape: metadata-only, no extra HBM pass.
        cos = cos.reshape(seq_len, dim)
        sin = sin.reshape(seq_len, dim)
    else:
        # Standard 2-D layout.  True output shape + cdiv grid (ragged final
        # block is masked by Pallas) -- no pad-then-slice copy.
        inv_half = 1.0 / (base ** (jnp.arange(0, dim, 2, dtype=jnp.float32) / dim))
        tile = seq_tile if seq_tile is not None else _pick_tile_rows(
            seq_len, dim * itemsize, sublane_mult)
        grid = (pl.cdiv(seq_len, tile),)

        if half < _LANE:
            # Half-width gives no EUP saving here (sub-128-lane vregs are still
            # full vregs); compute full width, fully lane-dense.
            inv_freq = jnp.concatenate([inv_half, inv_half]).reshape(1, dim)
            kernel = _rope_full_kernel
            in_spec = pl.BlockSpec((1, dim), lambda i: (0, 0))
            trans = 2 * seq_len * dim
        else:
            inv_freq = inv_half.reshape(1, half)
            kernel = _rope_split_kernel
            in_spec = pl.BlockSpec((1, half), lambda i: (0, 0))
            trans = seq_len * dim          # cos + sin on half-width freqs

        cost = pl.CostEstimate(
            flops=2 * seq_len * dim,
            transcendentals=trans,
            bytes_accessed=2 * seq_len * dim * itemsize + dim * 4,
        )
        cos, sin = pl.pallas_call(
            kernel,
            out_shape=(
                jax.ShapeDtypeStruct((seq_len, dim), out_dtype),
                jax.ShapeDtypeStruct((seq_len, dim), out_dtype),
            ),
            grid_spec=pltpu.PrefetchScalarGridSpec(
                num_scalar_prefetch=0,
                grid=grid,
                in_specs=[in_spec],
                out_specs=[
                    pl.BlockSpec((tile, dim), lambda i: (i, 0)),
                    pl.BlockSpec((tile, dim), lambda i: (i, 0)),
                ],
            ),
            compiler_params=cparams,
            cost_estimate=cost,
        )(inv_freq)

    return cos[None, None, :, :], sin[None, None, :, :]


class RotaryEmbedding:
    """Mirrors the PyTorch module's forward: cached tables up to max_seq_length,
    recomputed on the fly for longer sequences."""

    def __init__(self, dim, max_seq_length=2048, base=10000):
        self.dim = dim
        self.max_seq_length = max_seq_length
        self.base = base
        self.cos_cached, self.sin_cached = rotary_tables(dim, max_seq_length, base)

    def __call__(self, x, seq_len=None):
        if seq_len is None:
            seq_len = x.shape[-2]
        if seq_len > self.max_seq_length:
            return rotary_tables(self.dim, seq_len, self.base)
        return (self.cos_cached[:, :, :seq_len], self.sin_cached[:, :, :seq_len])


def _reference(dim, seq_len, base=10000):
    inv_freq = 1.0 / (base ** (jnp.arange(0, dim, 2, dtype=jnp.float32) / dim))
    t = jnp.arange(seq_len, dtype=jnp.float32)
    freqs = jnp.einsum("i,j->ij", t, inv_freq)
    emb = jnp.concatenate([freqs, freqs], axis=-1)
    return jnp.cos(emb)[None, None], jnp.sin(emb)[None, None]


if __name__ == "__main__":
    # Small shapes consistent with the module's forward: hidden dim=32, seq=8.
    dim, seq_len, max_seq = 32, 8, 16

    key = jax.random.PRNGKey(0)
    # x is only used by the module for device placement / seq_len inference.
    x = jax.random.normal(key, (2, 4, seq_len, dim), dtype=jnp.float32)

    rope = RotaryEmbedding(dim, max_seq_length=max_seq)

    # Cached path (seq_len <= max_seq_length): flat lane-dense kernel.
    cos, sin = rope(x, seq_len=seq_len)
    jax.block_until_ready((cos, sin))
    cos_ref, sin_ref = _reference(dim, seq_len)
    assert cos.shape == (1, 1, seq_len, dim)
    assert sin.shape == (1, 1, seq_len, dim)
    assert jnp.allclose(cos, cos_ref, atol=1e-5), "cos mismatch (flat path)"
    assert jnp.allclose(sin, sin_ref, atol=1e-5), "sin mismatch (flat path)"

    # Recompute path (seq_len > max_seq_length), as in the PyTorch forward.
    cos_l, sin_l = rope(x, seq_len=24)
    jax.block_until_ready((cos_l, sin_l))
    cos_l_ref, sin_l_ref = _reference(dim, 24)
    assert jnp.allclose(cos_l, cos_l_ref, atol=1e-5), "cos mismatch (recompute path)"
    assert jnp.allclose(sin_l, sin_l_ref, atol=1e-5), "sin mismatch (recompute path)"

    # dim=128 (most common head dim): full-width 2-D path, lane-dense stores.
    cos2, sin2 = rotary_tables(128, 64)
    jax.block_until_ready((cos2, sin2))
    cos2_ref, sin2_ref = _reference(128, 64)
    assert jnp.allclose(cos2, cos2_ref, atol=1e-5), "cos mismatch (full 2-D path)"
    assert jnp.allclose(sin2, sin2_ref, atol=1e-5), "sin mismatch (full 2-D path)"

    # dim=256: half-width split path + slice stores; seq_tile=32 forces a ragged
    # final grid block (rows 32..39 of 40) to exercise masked writeback.
    cos3, sin3 = rotary_tables(256, 40, seq_tile=32)
    jax.block_until_ready((cos3, sin3))
    cos3_ref, sin3_ref = _reference(256, 40)
    assert jnp.allclose(cos3, cos3_ref, atol=1e-5), "cos mismatch (split path)"
    assert jnp.allclose(sin3, sin3_ref, atol=1e-5), "sin mismatch (split path)"

    print("KERNEL_OK")
</pallas_src>

<mosaic_0001>
module attributes {stable_mosaic.version = 11 : i64} {
  func.func @_rope_flat_kernel(%arg0: i32, %arg1: memref<1x128xf32, #tpu.memory_space<vmem>>, %arg2: memref<1x128xf32, #tpu.memory_space<vmem>>, %arg3: memref<4x128xf32, #tpu.memory_space<vmem>>, %arg4: memref<4x128xf32, #tpu.memory_space<vmem>>) attributes {dimension_semantics = [#tpu.dimension_semantics<parallel>], iteration_bounds = array<i64: 1>, scalar_prefetch = 0 : i64, scratch_operands = 0 : i64, tpu.core_type = #tpu.core_type<tc>, window_params = [{pipeline_mode = #tpu.pipeline_mode<synchronous>, transform_indices = @transform_0, window_bounds = array<i64: 1, 128>}, {pipeline_mode = #tpu.pipeline_mode<synchronous>, transform_indices = @transform_1, window_bounds = array<i64: 1, 128>}, {transform_indices = @transform_2, window_bounds = array<i64: 4, 128>}, {transform_indices = @transform_3, window_bounds = array<i64: 4, 128>}]} {
    %c4_i32 = arith.constant 4 : i32
    %0 = arith.muli %arg0, %c4_i32 : i32
    %1 = tpu.iota {dimensions = array<i32: 0>} : vector<4x128xi32>
    %2 = vector.broadcast %0 : i32 to vector<4x128xi32>
    %3 = arith.addi %1, %2 : vector<4x128xi32>
    %4 = arith.sitofp %3 : vector<4x128xi32> to vector<4x128xf32>
    %cst = arith.constant 4.000000e+00 : f32
    %5 = vector.broadcast %cst : f32 to vector<4x128xf32>
    %6 = arith.mulf %4, %5 : vector<4x128xf32>
    %c0 = arith.constant 0 : index
    %c0_0 = arith.constant 0 : index
    %7 = vector.load %arg2[%c0, %c0_0] : memref<1x128xf32, #tpu.memory_space<vmem>>, vector<1x128xf32>
    %8 = vector.broadcast %7 : vector<1x128xf32> to vector<4x128xf32>
    %9 = arith.addf %6, %8 : vector<4x128xf32>
    %c0_1 = arith.constant 0 : index
    %c0_2 = arith.constant 0 : index
    %10 = vector.load %arg1[%c0_1, %c0_2] : memref<1x128xf32, #tpu.memory_space<vmem>>, vector<1x128xf32>
    %11 = vector.broadcast %10 : vector<1x128xf32> to vector<4x128xf32>
    %12 = arith.mulf %9, %11 : vector<4x128xf32>
    %13 = math.cos %12 : vector<4x128xf32>
    %c0_3 = arith.constant 0 : index
    %c0_4 = arith.constant 0 : index
    %14 = vector.load %arg3[%c0_3, %c0_4] : memref<4x128xf32, #tpu.memory_space<vmem>>, vector<4x128xf32>
    tpu.vector_store %arg3[%c0_3, %c0_4], %13 {strides = array<i32>} : memref<4x128xf32, #tpu.memory_space<vmem>>, vector<4x128xf32>,
    %15 = math.sin %12 : vector<4x128xf32>
    %c0_5 = arith.constant 0 : index
    %c0_6 = arith.constant 0 : index
    %16 = vector.load %arg4[%c0_5, %c0_6] : memref<4x128xf32, #tpu.memory_space<vmem>>, vector<4x128xf32>
    tpu.vector_store %arg4[%c0_5, %c0_6], %15 {strides = array<i32>} : memref<4x128xf32, #tpu.memory_space<vmem>>, vector<4x128xf32>,
    return
  }
  func.func @transform_0(%arg0: i32) -> (i32, i32) {
    %c0_i32 = arith.constant 0 : i32
    %c0_i32_0 = arith.constant 0 : i32
    %c0_i32_1 = arith.constant 0 : i32
    return %c0_i32, %c0_i32_0 : i32, i32
  }
  func.func @transform_1(%arg0: i32) -> (i32, i32) {
    %c0_i32 = arith.constant 0 : i32
    %c0_i32_0 = arith.constant 0 : i32
    %c0_i32_1 = arith.constant 0 : i32
    return %c0_i32, %c0_i32_0 : i32, i32
  }
  func.func @transform_2(%arg0: i32) -> (i32, i32) {
    %c0_i32 = arith.constant 0 : i32
    %c0_i32_0 = arith.constant 0 : i32
    return %arg0, %c0_i32 : i32, i32
  }
  func.func @transform_3(%arg0: i32) -> (i32, i32) {
    %c0_i32 = arith.constant 0 : i32
    %c0_i32_0 = arith.constant 0 : i32
    return %arg0, %c0_i32 : i32, i32
  }
}

</mosaic_0001>

<bundles_post_ra>
// kernel: tpu_custom_call.1
= control target key start
LH: loop header
LB: loop body
LE: loop exit
PB: predicated region body
PF: predicated region fallthrough
CT: control target
= control target key end

     0   :  { %9 = vsyncpa [#allocation3], 0  ;;  %s443_s0 = inlined_call_operand.hbm [shape: f32[1,128], index: 0, kind: input, shape index: {}]   ;;  %s444_s1 = inlined_call_operand.vmem [shape: f32[1,128], index: 1, kind: input, shape index: {}]   ;;  %s445_s2 = inlined_call_operand.hbm [shape: f32[4,128], index: 2, kind: output, shape index: {0}]   ;;  %s446_s3 = inlined_call_operand.hbm [shape: f32[4,128], index: 3, kind: output, shape index: {1}]  }
   0x1   :  { %10 = vsyncpa [#allocation4], 0 }
   0x2   :  { %11 = vsyncpa [#allocation7], 0  ;;  %s381_s12 = smov [#allocation2]  }
   0x3   :  { %s18_s13 = sshll.u32 %s381_s12, 4  ;;  %s19_s13 = int_to_ptr.vmem [resolvable:$true] %s18_s13 }
   0x4   :  { %s323_s14 = scalar_lea.vmem %s19_s13, 16  ;;  %s327_s15 = scalar_lea.vmem %s19_s13, 32 }
   0x5   :  { %p324_p0 = scmp.ne.s32.totalorder %s19_s13, %s323_s14  ;;  %p328_p1 = scmp.lt.s32.totalorder %s19_s13, %s19_s13 }
   0x6   :  { %p329_p2 = scmp.lt.s32.totalorder %s327_s15, %s323_s14 }
   0x8   :  { %p330_p3 = por %p329_p2, %p328_p1 }
   0xa   :  { %p331_p4 = pnand %p330_p3, %p324_p0 }
   0xc   :  { %334 = shalt.err (!%p331_p4)
}
   0xd   :  { %21 = dma.hbm_to_vmem [thread:$0]  %s443_s0, 16, %s19_s13, [#allocation3]  }
   0xe   :  { %375 = dma.done.wait [#allocation3], 16  }
   0xf   :  { %376 = vsyncadd [#allocation3], 4294967280  ;;  %v28_v0 = vlaneseq  ;;  %v288_v4 = vld [vmem:[%s444_s1] ss:$0 sm:$0xff]  ;;  %v382_v19 = vmov 683565275  }
  0x10   :  { %v289_v5 = vld [vmem:[#allocation2] ss:$0 sm:$0xff]  ;;  %v383_v21 = vmov 2475754826   ;;  %v384_v23 = vmov 2131351028  }
  0x11   :  { %v29_v1 = vshrl.u32 %v28_v0, 7  ;;  %v385_v25 = vmov 2102212464   ;;  %v386_v27 = vmov 920167782   ;;  %s388_s0 = smov [#allocation5]  }
  0x12   :  { %v387_v34 = vmov 1326507024   ;;  %s265_s1 = sshll.u32 %s388_s0, 4  ;;  %s389_s20 = smov [#allocation6]   ;;  %s266_s1 = int_to_ptr.vmem [resolvable:$true] %s265_s1 }
  0x13   :  { %v32_v2 = vcvt.s32.f32 %v29_v1  ;;  %s275_s21 = sshll.u32 %s389_s20, 4  ;;  %s335_s22 = scalar_lea.vmem %s266_s1, 64  ;;  %s276_s21 = int_to_ptr.vmem [resolvable:$true] %s275_s21 }
  0x14   :  { %p336_p5 = scmp.ne.s32.totalorder %s266_s1, %s335_s22  ;;  %p340_p6 = scmp.lt.s32.totalorder %s266_s1, %s266_s1 }
  0x15   :  { %v33_v3 = vmul.f32 4.0, %v32_v2  ;;  %p341_p7 = scmp.lt.s32.totalorder %s335_s22, %s335_s22 }
  0x17   :  { %v41_v6 = vadd.f32 %v288_v4, %v33_v3  ;;  %p342_p8 = por %p341_p7, %p340_p6 }
  0x19   :  { %v416_v7 = vmul.f32 %v289_v5, %v41_v6  ;;  %p343_p9 = pnand %p342_p8, %p336_p5 }
  0x1b   :  { %v53_v8 = vand.u32 2139095040, %v416_v7  ;;  %v50_v10 = vand.u32 2147483647, %v416_v7  ;;  %vm52_vm7 = vcmp.lt.s32.totalorder %v416_v7, 0  ;;  %vm142_vm15 = vweird.f32 %v416_v7 }
  0x1d   :  { %v54_v9 = vshrl.u32 %v53_v8, 23  ;;  %v57_v13 = vand.u32 8388607, %v50_v10  ;;  %vm51_vm8 = vcmp.le.f32.partialorder %v50_v10, 0.7853982 }
  0x1f   :  { %v290_v11 = vadd.s32 4294967169, %v54_v9  ;;  %v58_v16 = vor.u32 8388608, %v57_v13 }
  0x21   :  { %v60_v12 = vadd.s32 1, %v290_v11  ;;  %v98_v36 = vshll.u32 %v58_v16, 8 }
  0x23   :  { %vm61_vm0 = vcmp.gt.s32.totalorder %v60_v12, 0 }
  0x24   :  { %v62_v14 = vsel %vm61_vm0, %v60_v12, 0 }
  0x25   :  { %v64_v15 = vand.u32 31, %v62_v14  ;;  %v63_v17 = vshrl.u32 %v62_v14, 5 }
  0x27   :  { %v65_v18 = vsub.s32 32, %v64_v15  ;;  %v67_v20 = vshll.u32 %v382_v19, %v64_v15  ;;  %v70_v22 = vshll.u32 %v383_v21, %v64_v15  ;;  %v73_v24 = vshll.u32 %v384_v23, %v64_v15 }
  0x28   :  { %v76_v26 = vshll.u32 %v385_v25, %v64_v15  ;;  %v79_v28 = vshll.u32 %v386_v27, %v64_v15  ;;  %vm82_vm1 = vcmp.lt.s32.totalorder %v63_v17, 1  ;;  %vm85_vm2 = vcmp.lt.s32.totalorder %v63_v17, 4 }
  0x29   :  { %v66_v29 = vshrl.u32 %v382_v19, %v65_v18  ;;  %v68_v30 = vshrl.u32 %v383_v21, %v65_v18  ;;  %v71_v31 = vshrl.u32 %v384_v23, %v65_v18  ;;  %v74_v32 = vshrl.u32 %v385_v25, %v65_v18 }
  0x2a   :  { %v77_v33 = vshrl.u32 %v386_v27, %v65_v18  ;;  %v80_v35 = vshrl.u32 %v387_v34, %v65_v18  ;;  %vm83_vm3 = vcmp.lt.s32.totalorder %v63_v17, 2  ;;  %vm84_vm4 = vcmp.lt.s32.totalorder %v63_v17, 3 }
  0x2b   :  { %v69_v37 = vor.u32 %v68_v30, %v67_v20  ;;  %v72_v38 = vor.u32 %v71_v31, %v70_v22  ;;  %v75_v39 = vor.u32 %v74_v32, %v73_v24 }
  0x2c   :  { %v78_v40 = vor.u32 %v77_v33, %v76_v26  ;;  %v81_v41 = vor.u32 %v80_v35, %v79_v28 }
  0x2d   :  { %v86_v42 = vsel %vm82_vm1, %v66_v29, %v69_v37  ;;  %v87_v43 = vsel %vm85_vm2, %v75_v39, 2102212464  ;;  %v90_v44 = vsel %vm82_vm1, %v69_v37, %v72_v38  ;;  %v94_v45 = vsel %vm82_vm1, %v72_v38, %v75_v39 }
  0x2e   :  { %v88_v46 = vsel %vm84_vm4, %v72_v38, %v87_v43  ;;  %v91_v47 = vsel %vm85_vm2, %v78_v40, 920167782  ;;  %v95_v48 = vsel %vm85_vm2, %v81_v41, 1326507024 }
  0x2f   :  { %v92_v49 = vsel %vm84_vm4, %v75_v39, %v91_v47  ;;  %v96_v50 = vsel %vm84_vm4, %v78_v40, %v95_v48  ;;  %v89_v51 = vsel %vm83_vm3, %v86_v42, %v88_v46 }
  0x30   :  { %v93_v52 = vsel %vm83_vm3, %v90_v44, %v92_v49  ;;  %v97_v53 = vsel %vm83_vm3, %v94_v45, %v96_v50  ;;  %v105_v58 = vmul.u32 %v98_v36, %v89_v51 }
  0x31   :  { %v422_v54 = vmul.u32.u64.low %v98_v36, %v97_v53  ;;  %v423_v55 = vmul.u32.u64.high %v98_v36, %v97_v53, %v422_v54  ;;  %v425_v56 = vmul.u32.u64.low %v98_v36, %v93_v52  ;;  %v426_v57 = vmul.u32.u64.high %v98_v36, %v93_v52, %v425_v56 }
  0x33   :  { %vm107_vm5 = vc.u32 %v423_v55, %v425_v56  ;;  %v108_v59 = vadd.s32 1, %v426_v57  ;;  %v106_v6 = vadd.s32 %v425_v56, %v423_v55 }
  0x35   :  { %v109_v60 = vsel %vm107_vm5, %v108_v59, %v426_v57 }
  0x36   :  { %v110_v61 = vadd.s32 %v109_v60, %v105_v58 }
  0x38   :  { %v111_v62 = vadd.s32 536870912, %v110_v61 }
  0x3a   :  { %v112_v63 = vshrl.u32 %v111_v62, 30 }
  0x3c   :  { %v113_v0 = vshll.u32 %v112_v63, 30  ;;  %v136_v21 = vsub.s32 4, %v112_v63 }
  0x3e   :  { %v114_v1 = vsub.s32 %v110_v61, %v113_v0  ;;  %v137_v24 = vsel %vm52_vm7, %v136_v21, %v112_v63 }
  0x3f   :  { %v139_v26 = vsel %vm51_vm8, 0, %v137_v24 }
  0x40   :  { %v116_v2 = vsub.s32 0, %v114_v1  ;;  %v247_v27 = vadd.s32 3, %v139_v26  ;;  %v143_v28 = vand.u32 3, %v139_v26 }
  0x42   :  { %v291_v3 = vmin.u32 %v116_v2, %v114_v1  ;;  %v248_v29 = vand.u32 3, %v247_v27  ;;  %vm148_vm9 = vcmp.eq.s32.totalorder %v143_v28, 2  ;;  %vm145_vm11 = vcmp.eq.s32.totalorder %v143_v28, 0 }
  0x43   :  { %vm144_vm13 = vcmp.lt.s32.totalorder %v143_v28, 2 }
  0x44   :  { %v118_v4 = vclz %v291_v3  ;;  %vm253_vm10 = vcmp.eq.s32.totalorder %v248_v29, 2  ;;  %vm250_vm12 = vcmp.eq.s32.totalorder %v248_v29, 0  ;;  %vm249_vm14 = vcmp.lt.s32.totalorder %v248_v29, 2 }
  0x46   :  { %v292_v5 = vadd.s32 4294967294, %v118_v4 }
  0x48   :  { %vm293_vm6 = vcmp.lt.s32.totalorder %v292_v5, 0 }
  0x49   :  { %v121_v8 = vsel %vm293_vm6, 0, %v292_v5 }
  0x4a   :  { %v122_v9 = vsub.s32 32, %v121_v8  ;;  %v123_v11 = vshll.u32 %v114_v1, %v121_v8  ;;  %v126_v12 = vsub.s32 4294967266, %v121_v8 }
  0x4c   :  { %v124_v13 = vshrl.u32 %v106_v6, %v122_v9  ;;  %v127_v14 = vadd.s32 127, %v126_v12 }
  0x4e   :  { %v125_v15 = vor.u32 %v124_v13, %v123_v11  ;;  %v128_v16 = vshll.u32 %v127_v14, 23 }
  0x50   :  { %v129_v17 = vor.u32 4788187, %v128_v16  ;;  %v132_v18 = vcvt.s32.f32 %v125_v15 }
  0x52   :  { %v130_v19 = vand.u32 2147483647, %v129_v17 }
  0x54   :  { %v133_v20 = vmul.f32 %v132_v18, %v130_v19 }
  0x56   :  { %v134_v22 = vxor.u32 2147483648, %v133_v20 }
  0x58   :  { %v135_v23 = vsel %vm52_vm7, %v134_v22, %v133_v20 }
  0x59   :  { %v138_v25 = vsel %vm51_vm8, %v416_v7, %v135_v23 }
  0x5a   :  { %311 = vcosq.f32 %v138_v25 }
  0x5b   :  { %313 = vsinq.f32 %v138_v25 }
  0x67   :  { %v312_v30 = vpop.eup %311 }
  0x68   :  { %v314_v31 = vpop.eup %313  ;;  %v149_v32 = vxor.u32 2147483648, %v312_v30 }
  0x69   :  { %v146_v10 = vxor.u32 2147483648, %v314_v31 }
  0x6a   :  { %v150_v33 = vsel %vm148_vm9, %v149_v32, %v314_v31  ;;  %v255_v34 = vsel %vm253_vm10, %v149_v32, %v314_v31 }
  0x6b   :  { %v147_v35 = vsel %vm145_vm11, %v312_v30, %v146_v10  ;;  %v252_v36 = vsel %vm250_vm12, %v312_v30, %v146_v10 }
  0x6c   :  { %v151_v37 = vsel %vm144_vm13, %v147_v35, %v150_v33  ;;  %v256_v38 = vsel %vm249_vm14, %v252_v36, %v255_v34 }
  0x6d   :  { %v152_v39 = vsel %vm142_vm15, nan, %v151_v37  ;;  %v257_v40 = vsel %vm142_vm15, nan, %v256_v38 }
  0x6e   :  { %153 = vst [vmem:[#allocation5] sm:$0xf] %v152_v39  ;;  %258 = vst [vmem:[#allocation6] sm:$0xf] %v257_v40 }
  0x6f   :  { %346 = shalt.err (!%p343_p9)
}
  0x70   :  { %268 = dma.vmem_to_hbm [thread:$0]  %s266_s1, 64, %s445_s2, [#allocation4]  }
  0x71   :  { %s355_s25 = scalar_lea.vmem %s276_s21, 64  ;;  %p360_p11 = scmp.lt.s32.totalorder %s276_s21, %s276_s21 }
  0x72   :  { %p356_p10 = scmp.ne.s32.totalorder %s276_s21, %s355_s25  ;;  %p361_p12 = scmp.lt.s32.totalorder %s355_s25, %s355_s25 }
  0x74   :  { %p362_p13 = por %p361_p12, %p360_p11 }
  0x76   :  { %p363_p0 = pnand %p362_p13, %p356_p10 }
  0x78   :  { %366 = shalt.err (!%p363_p0)
}
  0x79   :  { %278 = dma.vmem_to_hbm [thread:$0]  %s276_s21, 64, %s446_s3, [#allocation7]  }
  0x7a   :  { %377 = dma.done.wait [#allocation4], 64  }
  0x7b   :  { %378 = vsyncadd [#allocation4], 4294967232 }
  0x7c   :  { %379 = dma.done.wait [#allocation7], 64  }
  0x7d   :  { %380 = vsyncadd [#allocation7], 4294967232 }
  0x7e   :  { %285 = vsyncpa [#allocation3], 1 }
  0x7f   :  { %286 = vsyncpa [#allocation4], 1 }
  0x80   :  { %287 = vsyncpa [#allocation7], 1 }

</bundles_post_ra>
